<compile_context>
chip_gen: v7x
topology: tpu7x:2x2x1
jax: 0.10.0
libtpu: 0.0.40
codegen_flags: <defaults>
</compile_context>

<pallas_src>
import math

import jax
import jax.numpy as jnp
from jax.experimental import pallas as pl
from jax.experimental.pallas import tpu as pltpu


def make_positional_embedding_table(T: int, output_dim: int, dtype=jnp.float32):
    """Builds the (T+1, output_dim) sinusoidal table (== the module's `pe` buffer)."""
    position = jnp.arange(T + 1, dtype=jnp.float32)[:, None]                 # (T+1, 1)
    div_term = jnp.exp(
        jnp.arange(0, output_dim, 2, dtype=jnp.float32)
        * (-math.log(10000.0) / output_dim)
    )                                                                        # (ceil(D/2),)
    angles = position * div_term                                             # (T+1, ceil(D/2))
    pe = jnp.zeros((T + 1, output_dim), dtype=jnp.float32)
    pe = pe.at[:, 0::2].set(jnp.sin(angles))
    # Guard odd output_dim: the cos half has floor(D/2) columns.
    pe = pe.at[:, 1::2].set(jnp.cos(angles)[:, : output_dim // 2])
    return pe.astype(dtype)


def _gather_kernel(idx_ref, pe_ref, o_ref):
    # idx_ref: SMEM (B,) int32       -- clamped timestep indices
    # pe_ref:  VMEM (T+1, D)         -- full sinusoidal table, resident
    # o_ref:   VMEM (B, D)           -- gathered rows, single block store
    B = idx_ref.shape[0]
    rows = [pe_ref[pl.ds(idx_ref[b], 1), :] for b in range(B)]  # B dynamic (1, D) reads
    o_ref[...] = jnp.concatenate(rows, axis=0)                  # one lane-dense (B, D) store


# Footprint thresholds (bytes).  Above the first we explicitly raise the VMEM
# limit; above the second (table cannot be comfortably VMEM-resident even on
# v7x's 64 MiB) we fall back to a plain XLA gather.
_DEFAULT_SCOPED_VMEM = 28 * 1024 * 1024
_MAX_RESIDENT_TABLE = 48 * 1024 * 1024


def positional_embedding(pe, x):
    """Forward pass: pe[x].reshape(B, D).  x: integer indices, shape (B,) or (B, 1)."""
    B = x.shape[0]
    idx = x.reshape(-1).astype(jnp.int32)
    if idx.shape[0] != B:
        raise ValueError("x must contain exactly one index per batch element")
    T1, D = pe.shape
    itemsize = jnp.dtype(pe.dtype).itemsize

    # Clamp so a bad index cannot produce an out-of-bounds VMEM read.
    idx = jnp.clip(idx, 0, T1 - 1)

    table_bytes = T1 * D * itemsize
    out_bytes = B * D * itemsize
    needed_bytes = table_bytes + out_bytes

    if table_bytes > _MAX_RESIDENT_TABLE:
        # Table too large to hold in VMEM (v7x has 64 MiB physical): a plain
        # XLA gather fuses with the consumer and beats a custom call here.
        return jnp.take(pe, idx, axis=0)

    compiler_kwargs = {}
    if needed_bytes > _DEFAULT_SCOPED_VMEM:
        # Leave headroom over the raw footprint; stays under v7x's 64 MiB.
        compiler_kwargs["vmem_limit_bytes"] = min(
            needed_bytes + (4 << 20), 60 * 1024 * 1024
        )

    return pl.pallas_call(
        _gather_kernel,
        out_shape=jax.ShapeDtypeStruct((B, D), pe.dtype),
        in_specs=[
            pl.BlockSpec(memory_space=pltpu.MemorySpace.SMEM),   # idx (scalars)
            pl.BlockSpec(memory_space=pltpu.MemorySpace.VMEM),   # full pe table
        ],
        out_specs=pl.BlockSpec(memory_space=pltpu.MemorySpace.VMEM),
        compiler_params=pltpu.CompilerParams(**compiler_kwargs),
        cost_estimate=pl.CostEstimate(
            flops=0,
            transcendentals=0,
            bytes_accessed=table_bytes + out_bytes + B * 4,  # table read + out write + idx
        ),
    )(idx, pe)


def _reference(pe, x):
    B = x.shape[0]
    return pe[x.reshape(-1)].reshape(B, pe.shape[1])


if __name__ == "__main__":
    # Small shapes consistent with the module: T timesteps, output_dim hidden, batch B.
    T, D, B = 16, 32, 2

    key = jax.random.PRNGKey(0)
    pe = make_positional_embedding_table(T, D)                    # (T+1, D) buffer
    x = jax.random.randint(key, (B,), minval=0, maxval=T + 1)     # timestep indices

    y = positional_embedding(pe, x)
    jax.block_until_ready(y)

    y_ref = _reference(pe, x)
    assert y.shape == (B, D)
    assert jnp.allclose(y, y_ref, atol=0.0, rtol=0.0), "mismatch vs reference gather"

    print("KERNEL_OK")
</pallas_src>

<mosaic_0001>
module attributes {stable_mosaic.version = 11 : i64} {
  func.func @_gather_kernel(%arg0: memref<2xi32, #tpu.memory_space<smem>>, %arg1: memref<17x32xf32, #tpu.memory_space<vmem>>, %arg2: memref<2x32xf32, #tpu.memory_space<vmem>>) attributes {dimension_semantics = [], scalar_prefetch = 0 : i64, scratch_operands = 0 : i64, tpu.core_type = #tpu.core_type<tc>} {
    %c0 = arith.constant 0 : index
    %0 = memref.load %arg0[%c0] : memref<2xi32, #tpu.memory_space<smem>>
    %1 = arith.index_cast %0 : i32 to index
    %c0_0 = arith.constant 0 : index
    %2 = vector.load %arg1[%1, %c0_0] : memref<17x32xf32, #tpu.memory_space<vmem>>, vector<1x32xf32>
    %c1 = arith.constant 1 : index
    %3 = memref.load %arg0[%c1] : memref<2xi32, #tpu.memory_space<smem>>
    %4 = arith.index_cast %3 : i32 to index
    %c0_1 = arith.constant 0 : index
    %5 = vector.load %arg1[%4, %c0_1] : memref<17x32xf32, #tpu.memory_space<vmem>>, vector<1x32xf32>
    %6 = tpu.concatenate %2, %5 in 0 : vector<1x32xf32>, vector<1x32xf32> -> vector<2x32xf32>
    %c0_2 = arith.constant 0 : index
    %c0_3 = arith.constant 0 : index
    %7 = vector.load %arg2[%c0_2, %c0_3] : memref<2x32xf32, #tpu.memory_space<vmem>>, vector<2x32xf32>
    tpu.vector_store %arg2[%c0_2, %c0_3], %6 {strides = array<i32>} : memref<2x32xf32, #tpu.memory_space<vmem>>, vector<2x32xf32>,
    return
  }
}

</mosaic_0001>

<bundles_post_ra>
// kernel: tpu_custom_call.1
= control target key start
LH: loop header
LB: loop body
LE: loop exit
PB: predicated region body
PF: predicated region fallthrough
CT: control target
= control target key end

     0   :  { %7 = vsyncpa [#allocation5], 0  ;;  %s190_s0 = inlined_call_operand.hbm [shape: s32[2], index: 0, kind: input, shape index: {}]   ;;  %s191_s1 = inlined_call_operand.hbm [shape: f32[17,32], index: 1, kind: input, shape index: {}]   ;;  %s192_s2 = inlined_call_operand.hbm [shape: f32[2,32], index: 2, kind: output, shape index: {}]  }
   0x1   :  { %8 = vsyncpa [#allocation3], 0 }
   0x2   :  { %9 = vsyncpa [#allocation4], 0  ;;  %s74_s11 = scalar_lea.hbm %s190_s0, 16 }
   0x3   :  { %p75_p0 = scmp.ne.s32.totalorder %s190_s0, %s74_s11  ;;  %p78_p1 = scmp.lt.u32.totalorder %s74_s11, %s190_s0 }
   0x5   :  { %p80_p2 = pnand %p78_p1, %p75_p0 }
   0x7   :  { %83 = shalt.err (!%p80_p2)
}
   0x8   :  { %s134_s16 = smov [#allocation2]   ;;  %s135_s19 = smov [#allocation6]  }
   0x9   :  { %17 = dma.hbm_to_smem %s190_s0, 16, %s134_s16, [#allocation5]  }
   0xa   :  { %s23_s20 = sshll.u32 %s135_s19, 4  ;;  %s84_s23 = scalar_lea.hbm %s191_s1, 384  ;;  %s24_s20 = int_to_ptr.vmem [resolvable:$true] %s23_s20 }
   0xb   :  { %p85_p3 = scmp.ne.s32.totalorder %s191_s1, %s84_s23  ;;  %p88_p4 = scmp.lt.u32.totalorder %s84_s23, %s191_s1 }
   0xd   :  { %p90_p5 = pnand %p88_p4, %p85_p3 }
   0xf   :  { %93 = shalt.err (!%p90_p5)
}
  0x10   :  { %s94_s28 = scalar_lea.vmem %s24_s20, 384  ;;  %p99_p7 = scmp.lt.s32.totalorder %s24_s20, %s24_s20 }
  0x11   :  { %p95_p6 = scmp.ne.s32.totalorder %s24_s20, %s94_s28  ;;  %p100_p8 = scmp.lt.s32.totalorder %s94_s28, %s94_s28 }
  0x13   :  { %p101_p9 = por %p100_p8, %p99_p7 }
  0x15   :  { %p102_p10 = pnand %p101_p9, %p95_p6 }
  0x17   :  { %105 = shalt.err (!%p102_p10)
}
  0x18   :  { %s136_s0 = smov 128   ;;  %s137_s29 = smov 8  }
  0x19   :  { %29 = dma.hbm_to_vmem [thread:$0]  %s191_s1, 384, %s24_s20, [#allocation3], %s136_s0, %s136_s0, %s137_s29  }
  0x1a   :  { %128 = dma.done.wait [#allocation5], 16  }
  0x1b   :  { %129 = vsyncadd [#allocation5], 4294967280 }
  0x1c   :  { %130 = dma.done.wait [#allocation3], 384  }
  0x1d   :  { %131 = vsyncadd [#allocation3], 4294966912 }
  0x1e   :  { %36 = sfence }
  0x1f   :  { %s37_s4 = sld [smem:[#allocation2]]  ;;  %s68_s5 = sld [smem:[#allocation2 + $0x1]]  ;;  %vm46_vm0 = vcmask 1040384   ;;  %vm48_vm1 = vcmask 254976  }
  0x20   :  { %s138_s6 = smov [#allocation7]  }
  0x21   :  { %s56_s7 = sshll.u32 %s138_s6, 4  ;;  %s57_s7 = int_to_ptr.vmem [resolvable:$true] %s56_s7 }
  0x22   :  { %s106_s1 = scalar_lea.vmem %s57_s7, 32  ;;  %p111_p12 = scmp.lt.s32.totalorder %s57_s7, %s57_s7 }
  0x23   :  { %p107_p11 = scmp.ne.s32.totalorder %s57_s7, %s106_s1  ;;  %p112_p13 = scmp.lt.s32.totalorder %s106_s1, %s106_s1 }
  0x25   :  { %s38_s8 = scalar_lea.vmem [#allocation6], %s37_s4  ;;  %s41_s9 = scalar_lea.vmem [#allocation6], %s68_s5 }
  0x26   :  { %v39_v0 = vld [vmem:[%s38_s8] sm:$0x1]  ;;  %p113_p0 = por %p112_p13, %p111_p12 }
  0x27   :  { %v42_v1 = vld [vmem:[%s41_s9] sm:$0x1] }
  0x28   :  { %v44_v2 = vrot.slane %v42_v1, 7  ;;  %p114_p1 = pnand %p113_p0, %p107_p11 }
  0x2a   :  { %v47_v3 = vsel %vm46_vm0, %v39_v0, %v44_v2 }
  0x2b   :  { %49 = vst.msk [vmem:[#allocation7] sm:$0x3] %vm48_vm1, %v47_v3 }
  0x2c   :  { %117 = shalt.err (!%p114_p1)
}
  0x2d   :  { %s118_s12 = scalar_lea.hbm %s192_s2, 32 }
  0x2e   :  { %p119_p2 = scmp.ne.s32.totalorder %s192_s2, %s118_s12  ;;  %p122_p3 = scmp.lt.u32.totalorder %s118_s12, %s192_s2 }
  0x30   :  { %p124_p4 = pnand %p122_p3, %p119_p2 }
  0x32   :  { %127 = shalt.err (!%p124_p4)
}
  0x33   :  { %59 = dma.vmem_to_hbm [thread:$0]  %s57_s7, 32, %s192_s2, [#allocation4]  }
  0x34   :  { %132 = dma.done.wait [#allocation4], 32  }
  0x35   :  { %133 = vsyncadd [#allocation4], 4294967264 }
  0x36   :  { %63 = vsyncpa [#allocation3], 1 }
  0x37   :  { %64 = vsyncpa [#allocation4], 1 }
  0x38   :  { %65 = vsyncpa [#allocation5], 1 }

</bundles_post_ra>
